<compile_context>
chip_gen: v5e
topology: v5e:2x2
jax: 0.10.0
libtpu: 0.0.40
codegen_flags: <defaults>
</compile_context>

<pallas_src>
import functools

import jax
import jax.numpy as jnp
from jax.experimental import pallas as pl
from jax.experimental.pallas import tpu as pltpu


def _softplus(x):
    # Numerically stable softplus; well within the 1e-3 check tolerance.
    # TODO(synk): switch to jnp.log1p once its Mosaic lowering is verified
    # (precision nicety only, same EUP cost).
    return jnp.maximum(x, 0.0) + jnp.log(1.0 + jnp.exp(-jnp.abs(x)))


def _mu_kernel(x_ref, p_ref, o_ref, *, cin, hw, t, bw):
    """Fused Mu_Estimator forward for one batch chunk.

    x_ref : [bpc, cin, T*H*W]   activations, native dtype (f32 or bf16)
    p_ref : [R, 5*bw] f32       packed parameter slab (lane-aligned blocks):
              cols [0        : cin     ]  w1                (rows 0:channel)
              cols [1*bw     : 1*bw + R]  w2, zero-padded to [R, R]
              cols [2*bw     : 2*bw + R]  w3, zero-padded to [R, R]
              cols [3*bw     : 3*bw + R]  w4, zero-padded    (rows >= out_nc zero)
              cols [4*bw + j]             b1, b2, b3, b4 bias columns
    o_ref : [R, bpc*T] f32      softplus(head) + 1e-6 (padded rows included)
    """
    bpc = x_ref.shape[0]
    r = p_ref.shape[0]

    # Static, vreg-aligned carve-outs of the parameter slab (free views).
    w1 = p_ref[:, 0:cin]
    w2 = p_ref[:, 1 * bw:1 * bw + r]
    w3 = p_ref[:, 2 * bw:2 * bw + r]
    w4 = p_ref[:, 3 * bw:3 * bw + r]
    b1 = p_ref[:, 4 * bw + 0:4 * bw + 1]
    b2 = p_ref[:, 4 * bw + 1:4 * bw + 2]
    b3 = p_ref[:, 4 * bw + 2:4 * bw + 3]
    b4 = p_ref[:, 4 * bw + 3:4 * bw + 4]

    # conv (1x1x1) + ReLU over the whole volume, then AdaptiveAvgPool2d(1)
    # as windowed lane reductions (HW contiguous lanes per (b, t) window).
    # bpc and t are tiny, so the static unroll is cheap; for very large B,
    # bound vreg pressure by lowering this to a fori_loop + VMEM accumulator.
    cols = []
    for lb in range(bpc):
        xb = x_ref[lb]                                              # [cin, THW]
        y = jnp.dot(w1.astype(xb.dtype), xb,
                    preferred_element_type=jnp.float32) + b1
        y = jnp.maximum(y, 0.0)                                     # [R, THW] f32
        for n in range(t):
            win = y[:, n * hw:(n + 1) * hw]                         # static view
            cols.append(jnp.sum(win, axis=-1, keepdims=True))       # XLU reduce
    pooled = jnp.concatenate(cols, axis=-1) * (1.0 / hw)            # [R, bpc*T]

    # mlp: three 1x1x1 convs (channel matmuls, f32 acc) + ReLU/ReLU/Softplus.
    h = jnp.maximum(
        jnp.dot(w2, pooled, preferred_element_type=jnp.float32) + b2, 0.0)
    h = jnp.maximum(
        jnp.dot(w3, h, preferred_element_type=jnp.float32) + b3, 0.0)
    z = jnp.dot(w4, h, preferred_element_type=jnp.float32) + b4
    o_ref[...] = _softplus(z) + 1e-6                                # full padded tile


def mu_estimator_forward(x, params, num_chunks=None):
    """x: [b, in_nc, T, H, W] (NCDHW) -> [b, out_nc, T, 1, 1]."""
    b, cin, t, h, w = x.shape
    channel = params["w1"].shape[0]
    out_nc = params["w4"].shape[0]
    hw = h * w
    thw = t * hw

    if num_chunks is None:
        # Default: 2-way "parallel" split so both v7x TensorCores are fed.
        # On single-TC chips (v5e/v6e) pass num_chunks=1 for one grid step.
        num_chunks = 2 if (b >= 2 and b % 2 == 0) else 1
    g = num_chunks
    bpc = b // g

    # Keep activations in their native dtype (no forced f32 cast / HBM pass).
    x2 = x.reshape(b, cin, thw)

    # Pack all parameters into one lane-aligned f32 slab (single operand).
    r = 8 * pl.cdiv(max(channel, out_nc), 8)          # padded row count (>= 8)
    bw = 128 * pl.cdiv(max(cin, r), 128)              # lane-aligned block width
    f32 = jnp.float32
    slab = jnp.zeros((r, 5 * bw), f32)
    slab = slab.at[:channel, 0:cin].set(params["w1"].astype(f32))
    slab = slab.at[:channel, 1 * bw:1 * bw + channel].set(params["w2"].astype(f32))
    slab = slab.at[:channel, 2 * bw:2 * bw + channel].set(params["w3"].astype(f32))
    slab = slab.at[:out_nc, 3 * bw:3 * bw + channel].set(params["w4"].astype(f32))
    slab = slab.at[:channel, 4 * bw + 0].set(params["b1"].astype(f32))
    slab = slab.at[:channel, 4 * bw + 1].set(params["b2"].astype(f32))
    slab = slab.at[:channel, 4 * bw + 2].set(params["b3"].astype(f32))
    slab = slab.at[:out_nc, 4 * bw + 3].set(params["b4"].astype(f32))

    out = pl.pallas_call(
        functools.partial(_mu_kernel, cin=cin, hw=hw, t=t, bw=bw),
        out_shape=jax.ShapeDtypeStruct((g, r, bpc * t), jnp.float32),
        grid=(g,),
        in_specs=[
            pl.BlockSpec((bpc, cin, thw), lambda i: (i, 0, 0)),   # batch chunk
            pl.BlockSpec((r, 5 * bw), lambda i: (0, 0)),          # param slab
        ],
        out_specs=pl.BlockSpec((None, r, bpc * t), lambda i: (i, 0, 0)),
        compiler_params=pltpu.CompilerParams(
            dimension_semantics=("parallel",)),
    )(x2, slab)

    # [g, R, bpc*T] -> [b, R, T] -> drop padded head rows -> [b, out_nc, T, 1, 1]
    out = out.reshape(g, r, bpc, t).transpose(0, 2, 1, 3).reshape(b, r, t)
    return out[:, :out_nc, :].reshape(b, out_nc, t, 1, 1)


# ------------------------------ reference & init ----------------------------

def reference(x, p):
    """Pure-JAX reference matching the PyTorch module (batched, NCDHW)."""
    y = jnp.einsum("oc,bcthw->bothw", p["w1"], x) + p["b1"][None, :, None, None, None]
    y = jnp.maximum(y, 0.0)
    pooled = jnp.mean(y, axis=(3, 4))                               # [b, C, T]
    h1 = jnp.maximum(jnp.einsum("oc,bct->bot", p["w2"], pooled)
                     + p["b2"][None, :, None], 0.0)
    h2 = jnp.maximum(jnp.einsum("oc,bct->bot", p["w3"], h1)
                     + p["b3"][None, :, None], 0.0)
    z = jnp.einsum("oc,bct->bot", p["w4"], h2) + p["b4"][None, :, None]
    out = jax.nn.softplus(z) + 1e-6
    return out[:, :, :, None, None]                                 # [b, out_nc, T, 1, 1]


def init_params(in_nc, channel, out_nc, key):
    ks = jax.random.split(key, 8)

    def u(k, shape, fan_in):
        bound = 1.0 / (fan_in ** 0.5)
        return jax.random.uniform(k, shape, jnp.float32, -bound, bound)

    return {
        "w1": u(ks[0], (channel, in_nc), in_nc),     "b1": u(ks[1], (channel,), in_nc),
        "w2": u(ks[2], (channel, channel), channel), "b2": u(ks[3], (channel,), channel),
        "w3": u(ks[4], (channel, channel), channel), "b3": u(ks[5], (channel,), channel),
        "w4": u(ks[6], (out_nc, channel), channel),  "b4": u(ks[7], (out_nc,), channel),
    }


if __name__ == "__main__":
    IN_NC, OUT_NC, CHANNEL = 8, 1, 8
    B, T, H, W = 2, 8, 16, 16          # NCDHW input: [2, 8, 8, 16, 16]

    key = jax.random.PRNGKey(0)
    kx, kp = jax.random.split(key)
    x = jax.random.normal(kx, (B, IN_NC, T, H, W), jnp.float32)
    params = init_params(IN_NC, CHANNEL, OUT_NC, kp)

    fwd = jax.jit(mu_estimator_forward)
    out = jax.block_until_ready(fwd(x, params))
    ref = reference(x, params)

    assert out.shape == (B, OUT_NC, T, 1, 1)
    assert bool(jnp.all(jnp.isfinite(out)))
    assert bool(jnp.allclose(out, ref, rtol=1e-3, atol=1e-3)), \
        float(jnp.max(jnp.abs(out - ref)))
    print("KERNEL_OK")
</pallas_src>

<mosaic_0001>
module attributes {stable_mosaic.version = 11 : i64} {
  func.func @_mu_kernel(%arg0: i32, %arg1: memref<1x8x2048xf32, #tpu.memory_space<vmem>>, %arg2: memref<8x640xf32, #tpu.memory_space<vmem>>, %arg3: memref<1x8x8xf32, #tpu.memory_space<vmem>>) attributes {dimension_semantics = [#tpu.dimension_semantics<parallel>], iteration_bounds = array<i64: 2>, scalar_prefetch = 0 : i64, scratch_operands = 0 : i64, tpu.core_type = #tpu.core_type<tc>, window_params = [{transform_indices = @transform_0, window_bounds = array<i64: 1, 8, 2048>}, {pipeline_mode = #tpu.pipeline_mode<synchronous>, transform_indices = @transform_1, window_bounds = array<i64: 8, 640>}, {transform_indices = @transform_2, window_bounds = array<i64: 1, 8, 8>}]} {
    %c0 = arith.constant 0 : index
    %c0_0 = arith.constant 0 : index
    %0 = vector.load %arg2[%c0, %c0_0] : memref<8x640xf32, #tpu.memory_space<vmem>>, vector<8x8xf32>
    %c0_1 = arith.constant 0 : index
    %c128 = arith.constant 128 : index
    %1 = vector.load %arg2[%c0_1, %c128] : memref<8x640xf32, #tpu.memory_space<vmem>>, vector<8x8xf32>
    %c0_2 = arith.constant 0 : index
    %c256 = arith.constant 256 : index
    %2 = vector.load %arg2[%c0_2, %c256] : memref<8x640xf32, #tpu.memory_space<vmem>>, vector<8x8xf32>
    %c0_3 = arith.constant 0 : index
    %c384 = arith.constant 384 : index
    %3 = vector.load %arg2[%c0_3, %c384] : memref<8x640xf32, #tpu.memory_space<vmem>>, vector<8x8xf32>
    %c0_4 = arith.constant 0 : index
    %c512 = arith.constant 512 : index
    %4 = vector.load %arg2[%c0_4, %c512] : memref<8x640xf32, #tpu.memory_space<vmem>>, vector<8x1xf32>
    %c0_5 = arith.constant 0 : index
    %c513 = arith.constant 513 : index
    %5 = vector.load %arg2[%c0_5, %c513] : memref<8x640xf32, #tpu.memory_space<vmem>>, vector<8x1xf32>
    %c0_6 = arith.constant 0 : index
    %c514 = arith.constant 514 : index
    %6 = vector.load %arg2[%c0_6, %c514] : memref<8x640xf32, #tpu.memory_space<vmem>>, vector<8x1xf32>
    %c0_7 = arith.constant 0 : index
    %c515 = arith.constant 515 : index
    %7 = vector.load %arg2[%c0_7, %c515] : memref<8x640xf32, #tpu.memory_space<vmem>>, vector<8x1xf32>
    %c0_8 = arith.constant 0 : index
    %c0_9 = arith.constant 0 : index
    %c0_10 = arith.constant 0 : index
    %8 = vector.load %arg1[%c0_8, %c0_9, %c0_10] : memref<1x8x2048xf32, #tpu.memory_space<vmem>>, vector<1x8x2048xf32>
    %9 = vector.shape_cast %8 : vector<1x8x2048xf32> to vector<8x2048xf32>
    %cst = arith.constant dense<0.000000e+00> : vector<8x2048xf32>
    %10 = tpu.matmul %0, %9, %cst {dimension_numbers = #tpu.dot_dimension_numbers<[1], [0], [0], [1], [0, 0, 1, 1], [], []>} : vector<8x8xf32>, vector<8x2048xf32>, vector<8x2048xf32> -> vector<8x2048xf32>
    %11 = vector.broadcast %4 : vector<8x1xf32> to vector<8x2048xf32>
    %12 = arith.addf %10, %11 : vector<8x2048xf32>
    %cst_11 = arith.constant 0.000000e+00 : f32
    %13 = vector.broadcast %cst_11 : f32 to vector<8x2048xf32>
    %14 = arith.maximumf %12, %13 : vector<8x2048xf32>
    %15 = vector.extract_strided_slice %14 {offsets = [0, 0], sizes = [8, 256], strides = [1, 1]} : vector<8x2048xf32> to vector<8x256xf32>
    %cst_12 = arith.constant dense<0.000000e+00> : vector<8xf32>
    %16 = vector.multi_reduction <add>, %15, %cst_12 [1] : vector<8x256xf32> to vector<8xf32>
    %17 = vector.shape_cast %16 : vector<8xf32> to vector<8x1xf32>
    %18 = vector.extract_strided_slice %14 {offsets = [0, 256], sizes = [8, 256], strides = [1, 1]} : vector<8x2048xf32> to vector<8x256xf32>
    %cst_13 = arith.constant dense<0.000000e+00> : vector<8xf32>
    %19 = vector.multi_reduction <add>, %18, %cst_13 [1] : vector<8x256xf32> to vector<8xf32>
    %20 = vector.shape_cast %19 : vector<8xf32> to vector<8x1xf32>
    %21 = vector.extract_strided_slice %14 {offsets = [0, 512], sizes = [8, 256], strides = [1, 1]} : vector<8x2048xf32> to vector<8x256xf32>
    %cst_14 = arith.constant dense<0.000000e+00> : vector<8xf32>
    %22 = vector.multi_reduction <add>, %21, %cst_14 [1] : vector<8x256xf32> to vector<8xf32>
    %23 = vector.shape_cast %22 : vector<8xf32> to vector<8x1xf32>
    %24 = vector.extract_strided_slice %14 {offsets = [0, 768], sizes = [8, 256], strides = [1, 1]} : vector<8x2048xf32> to vector<8x256xf32>
    %cst_15 = arith.constant dense<0.000000e+00> : vector<8xf32>
    %25 = vector.multi_reduction <add>, %24, %cst_15 [1] : vector<8x256xf32> to vector<8xf32>
    %26 = vector.shape_cast %25 : vector<8xf32> to vector<8x1xf32>
    %27 = vector.extract_strided_slice %14 {offsets = [0, 1024], sizes = [8, 256], strides = [1, 1]} : vector<8x2048xf32> to vector<8x256xf32>
    %cst_16 = arith.constant dense<0.000000e+00> : vector<8xf32>
    %28 = vector.multi_reduction <add>, %27, %cst_16 [1] : vector<8x256xf32> to vector<8xf32>
    %29 = vector.shape_cast %28 : vector<8xf32> to vector<8x1xf32>
    %30 = vector.extract_strided_slice %14 {offsets = [0, 1280], sizes = [8, 256], strides = [1, 1]} : vector<8x2048xf32> to vector<8x256xf32>
    %cst_17 = arith.constant dense<0.000000e+00> : vector<8xf32>
    %31 = vector.multi_reduction <add>, %30, %cst_17 [1] : vector<8x256xf32> to vector<8xf32>
    %32 = vector.shape_cast %31 : vector<8xf32> to vector<8x1xf32>
    %33 = vector.extract_strided_slice %14 {offsets = [0, 1536], sizes = [8, 256], strides = [1, 1]} : vector<8x2048xf32> to vector<8x256xf32>
    %cst_18 = arith.constant dense<0.000000e+00> : vector<8xf32>
    %34 = vector.multi_reduction <add>, %33, %cst_18 [1] : vector<8x256xf32> to vector<8xf32>
    %35 = vector.shape_cast %34 : vector<8xf32> to vector<8x1xf32>
    %36 = vector.extract_strided_slice %14 {offsets = [0, 1792], sizes = [8, 256], strides = [1, 1]} : vector<8x2048xf32> to vector<8x256xf32>
    %cst_19 = arith.constant dense<0.000000e+00> : vector<8xf32>
    %37 = vector.multi_reduction <add>, %36, %cst_19 [1] : vector<8x256xf32> to vector<8xf32>
    %38 = vector.shape_cast %37 : vector<8xf32> to vector<8x1xf32>
    %39 = tpu.concatenate %17, %20, %23, %26, %29, %32, %35, %38 in 1 : vector<8x1xf32>, vector<8x1xf32>, vector<8x1xf32>, vector<8x1xf32>, vector<8x1xf32>, vector<8x1xf32>, vector<8x1xf32>, vector<8x1xf32> -> vector<8x8xf32>
    %cst_20 = arith.constant 3.906250e-03 : f32
    %40 = vector.broadcast %cst_20 : f32 to vector<8x8xf32>
    %41 = arith.mulf %39, %40 : vector<8x8xf32>
    %cst_21 = arith.constant dense<0.000000e+00> : vector<8x8xf32>
    %42 = tpu.matmul %1, %41, %cst_21 {dimension_numbers = #tpu.dot_dimension_numbers<[1], [0], [0], [1], [0, 0, 1, 1], [], []>} : vector<8x8xf32>, vector<8x8xf32>, vector<8x8xf32> -> vector<8x8xf32>
    %43 = vector.broadcast %5 : vector<8x1xf32> to vector<8x8xf32>
    %44 = arith.addf %42, %43 : vector<8x8xf32>
    %cst_22 = arith.constant 0.000000e+00 : f32
    %45 = vector.broadcast %cst_22 : f32 to vector<8x8xf32>
    %46 = arith.maximumf %44, %45 : vector<8x8xf32>
    %cst_23 = arith.constant dense<0.000000e+00> : vector<8x8xf32>
    %47 = tpu.matmul %2, %46, %cst_23 {dimension_numbers = #tpu.dot_dimension_numbers<[1], [0], [0], [1], [0, 0, 1, 1], [], []>} : vector<8x8xf32>, vector<8x8xf32>, vector<8x8xf32> -> vector<8x8xf32>
    %48 = vector.broadcast %6 : vector<8x1xf32> to vector<8x8xf32>
    %49 = arith.addf %47, %48 : vector<8x8xf32>
    %cst_24 = arith.constant 0.000000e+00 : f32
    %50 = vector.broadcast %cst_24 : f32 to vector<8x8xf32>
    %51 = arith.maximumf %49, %50 : vector<8x8xf32>
    %cst_25 = arith.constant dense<0.000000e+00> : vector<8x8xf32>
    %52 = tpu.matmul %3, %51, %cst_25 {dimension_numbers = #tpu.dot_dimension_numbers<[1], [0], [0], [1], [0, 0, 1, 1], [], []>} : vector<8x8xf32>, vector<8x8xf32>, vector<8x8xf32> -> vector<8x8xf32>
    %53 = vector.broadcast %7 : vector<8x1xf32> to vector<8x8xf32>
    %54 = arith.addf %52, %53 : vector<8x8xf32>
    %cst_26 = arith.constant 0.000000e+00 : f32
    %55 = vector.broadcast %cst_26 : f32 to vector<8x8xf32>
    %56 = arith.maximumf %54, %55 : vector<8x8xf32>
    %57 = math.absf %54 : vector<8x8xf32>
    %cst_27 = arith.constant 0.000000e+00 : f32
    %58 = vector.broadcast %cst_27 : f32 to vector<8x8xf32>
    %59 = arith.subf %58, %57 : vector<8x8xf32>
    %60 = math.exp %59 : vector<8x8xf32>
    %cst_28 = arith.constant 1.000000e+00 : f32
    %61 = vector.broadcast %cst_28 : f32 to vector<8x8xf32>
    %62 = arith.addf %61, %60 : vector<8x8xf32>
    %63 = math.log %62 : vector<8x8xf32>
    %64 = arith.addf %56, %63 : vector<8x8xf32>
    %cst_29 = arith.constant 9.99999997E-7 : f32
    %65 = vector.broadcast %cst_29 : f32 to vector<8x8xf32>
    %66 = arith.addf %64, %65 : vector<8x8xf32>
    %c0_30 = arith.constant 0 : index
    %c0_31 = arith.constant 0 : index
    %c0_32 = arith.constant 0 : index
    %67 = vector.load %arg3[%c0_30, %c0_31, %c0_32] : memref<1x8x8xf32, #tpu.memory_space<vmem>>, vector<1x8x8xf32>
    %68 = vector.shape_cast %67 : vector<1x8x8xf32> to vector<8x8xf32>
    %69 = vector.shape_cast %66 : vector<8x8xf32> to vector<1x8x8xf32>
    tpu.vector_store %arg3[%c0_30, %c0_31, %c0_32], %69 {strides = array<i32>} : memref<1x8x8xf32, #tpu.memory_space<vmem>>, vector<1x8x8xf32>,
    return
  }
  func.func @transform_0(%arg0: i32) -> (i32, i32, i32) {
    %c0_i32 = arith.constant 0 : i32
    %c0_i32_0 = arith.constant 0 : i32
    %c0_i32_1 = arith.constant 0 : i32
    return %arg0, %c0_i32, %c0_i32_0 : i32, i32, i32
  }
  func.func @transform_1(%arg0: i32) -> (i32, i32) {
    %c0_i32 = arith.constant 0 : i32
    %c0_i32_0 = arith.constant 0 : i32
    %c0_i32_1 = arith.constant 0 : i32
    return %c0_i32, %c0_i32_0 : i32, i32
  }
  func.func @transform_2(%arg0: i32) -> (i32, i32, i32) {
    %c0_i32 = arith.constant 0 : i32
    %c0_i32_0 = arith.constant 0 : i32
    %c0_i32_1 = arith.constant 0 : i32
    return %arg0, %c0_i32, %c0_i32_0 : i32, i32, i32
  }
}

</mosaic_0001>

<bundles_post_ra>
// kernel: mu_estimator_forward.1
= control target key start
LH: loop header
LB: loop body
LE: loop exit
PB: predicated region body
PF: predicated region fallthrough
CT: control target
= control target key end

     0   :  { %s772_s9 = smov 0   ;;  %s852_s0 = inlined_call_operand.vmem [shape: f32[2,8,2048], index: 0, kind: input, shape index: {}]   ;;  %s853_s1 = inlined_call_operand.vmem [shape: f32[8,640], index: 1, kind: input, shape index: {}]   ;;  %s854_s2 = inlined_call_operand.vmem [shape: f32[2,8,8], index: 2, kind: output, shape index: {}]  }
   0x1 LB: > { %s694_s10 = sadd.s32 4294967295, %s751_s9   ;;  %p698_p0 = scmp.ge.s32.totalorder %s751_s9, 1  ;;  %s751_s9 = sphi %s772_s9, %s12_s9  }
   0x2   : > { %p112_p1 = scmp.lt.s32.totalorder %s751_s9, 3 }
   0x4   : > { %p113_p2 = pnand %p698_p0, %p112_p1 }
   0x5   : > { %p133_p3 = scmp.lt.s32.totalorder (!%p113_p2), %s694_s10, 1 }
   0x6   : > { %116 = sbr.rel (%p113_p2) target bundleno = 726 (0x2d6), region = 28 }
   0xb   : > { %v783_v0 = vld [vmem:[%s853_s1 + $0x20] sm:$0xff]  ;;  %v753_v1 = vmov 0   ;;  %s856_s10 = smov (!%p133_p3, %s694_s10), 1  ;;  %vm168_vm0 = vcmask 64512   ;;  %vm532_vm1 = vcmask 7168   ;;  %vm534_vm2 = vcmask 15360  }
   0xc   : > { %736 = vset.pattern.permute.xlu0 %v753_v1  ;;  %s723_s13 = sshll.u32 %s856_s10, 7  ;;  %v142_v2 = vld [vmem:[%s853_s1] sm:$0xff]  ;;  %vm536_vm3 = vcmask 23552   ;;  %vm538_vm4 = vcmask 31744   ;;  %vm540_vm5 = vcmask 39936   ;;  %vm542_vm6 = vcmask 48128  }
   0xd   : > { %165 = vperm.xlu0 %736, %v783_v0   ;;  %s792_s16 = scalar_lea.vmem %s852_s0, %s723_s13  ;;  %vm544_vm7 = vcmask 56320   ;;  %s701_s25 = sshll.u32 %s856_s10, 3 }
   0xe   : > { %v147_v3 = vld [vmem:[%s792_s16] sm:$0xff]  ;;  %v148_v4 = vld [vmem:[%s792_s16 + $0x8] sm:$0xff]  ;;  %v149_v5 = vld [vmem:[%s792_s16 + $0x10] sm:$0xff]  ;;  %s141_s28 = scalar_lea.vmem %s854_s2, %s701_s25 }
   0xf   : > { %187 = vmatpush.msra.mxu0 %v147_v3  ;;  %207 = vmatpush.msra.mxu1 %v148_v4  ;;  %v150_v6 = vld [vmem:[%s792_s16 + $0x18] sm:$0xff]  ;;  %v151_v7 = vld [vmem:[%s792_s16 + $0x20] sm:$0xff]  ;;  %v152_v8 = vld [vmem:[%s792_s16 + $0x28] sm:$0xff] }
  0x10   : > { %227 = vmatpush.msra.mxu2 %v149_v5  ;;  %247 = vmatpush.msra.mxu3 %v150_v6  ;;  %v153_v9 = vld [vmem:[%s792_s16 + $0x30] sm:$0xff]  ;;  %v154_v10 = vld [vmem:[%s792_s16 + $0x38] sm:$0xff]  ;;  %v155_v11 = vld [vmem:[%s792_s16 + $0x40] sm:$0xff] }
  0x11   : > { %702 = vmatmul.msk.f32.vlgmr.msra.gmra.mxu0 %vm168_vm0, %v142_v2  ;;  %703 = vmatmul.msk.f32.vlgmr.msra.gmra.mxu1 %vm168_vm0, %v142_v2  ;;  %v156_v12 = vld [vmem:[%s792_s16 + $0x48] sm:$0xff]  ;;  %v157_v13 = vld [vmem:[%s792_s16 + $0x50] sm:$0xff]  ;;  %v158_v14 = vld [vmem:[%s792_s16 + $0x58] sm:$0xff] }
  0x12   : > { %704 = vmatmul.msk.f32.vlgmr.msra.gmra.mxu2 %vm168_vm0, %v142_v2  ;;  %705 = vmatmul.msk.f32.vlgmr.msra.gmra.mxu3 %vm168_vm0, %v142_v2  ;;  %v159_v15 = vld [vmem:[%s792_s16 + $0x60] sm:$0xff]  ;;  %v160_v16 = vld [vmem:[%s792_s16 + $0x68] sm:$0xff]  ;;  %v161_v17 = vld [vmem:[%s792_s16 + $0x70] sm:$0xff] }
  0x13   : > { %267 = vmatpush.msrb.mxu0 %v151_v7  ;;  %287 = vmatpush.msrb.mxu1 %v152_v8  ;;  %v162_v18 = vld [vmem:[%s792_s16 + $0x78] sm:$0xff] }
  0x14   : > { %307 = vmatpush.msrb.mxu2 %v153_v9  ;;  %327 = vmatpush.msrb.mxu3 %v154_v10 }
  0x15   : > { %347 = vmatpush.msra.mxu0 %v155_v11  ;;  %367 = vmatpush.msra.mxu1 %v156_v12 }
  0x16   : > { %387 = vmatpush.msra.mxu2 %v157_v13  ;;  %407 = vmatpush.msra.mxu3 %v158_v14  ;;  %v754_v13 = vmov 1  }
  0x17   : > { %737 = vset.pattern.permute.xlu2 %v754_v13 }
  0x19   : > { %706 = vmatmul.msk.f32.vlgmr.msrb.gmra.mxu0 %vm168_vm0, %v142_v2  ;;  %707 = vmatmul.msk.f32.vlgmr.msrb.gmra.mxu1 %vm168_vm0, %v142_v2 }
  0x1a   : > { %708 = vmatmul.msk.f32.vlgmr.msrb.gmra.mxu2 %vm168_vm0, %v142_v2  ;;  %709 = vmatmul.msk.f32.vlgmr.msrb.gmra.mxu3 %vm168_vm0, %v142_v2 }
  0x1b   : > { %427 = vmatpush.msrb.mxu0 %v159_v15  ;;  %447 = vmatpush.msrb.mxu1 %v160_v16 }
  0x1c   : > { %467 = vmatpush.msrb.mxu2 %v161_v17  ;;  %487 = vmatpush.msrb.mxu3 %v162_v18 }
  0x21   : > { %710 = vmatmul.msk.f32.vlgmr.msra.gmra.mxu0 %vm168_vm0, %v142_v2  ;;  %711 = vmatmul.msk.f32.vlgmr.msra.gmra.mxu1 %vm168_vm0, %v142_v2 }
  0x22   : > { %712 = vmatmul.msk.f32.vlgmr.msra.gmra.mxu2 %vm168_vm0, %v142_v2  ;;  %713 = vmatmul.msk.f32.vlgmr.msra.gmra.mxu3 %vm168_vm0, %v142_v2 }
  0x29   : > { %714 = vmatmul.msk.f32.vlgmr.msrb.gmra.mxu0 %vm168_vm0, %v142_v2  ;;  %715 = vmatmul.msk.f32.vlgmr.msrb.gmra.mxu1 %vm168_vm0, %v142_v2 }
  0x2a   : > { %716 = vmatmul.msk.f32.vlgmr.msrb.gmra.mxu2 %vm168_vm0, %v142_v2  ;;  %717 = vmatmul.msk.f32.vlgmr.msrb.gmra.mxu3 %vm168_vm0, %v142_v2 }
  0x7f   : > { %v166_v19 = vpop.permute.xlu0 %165 }
  0x8e   : > { %v189_v20 = vpop.f32.mrf.mxu0  ;;  %v209_v21 = vpop.f32.mrf.mxu1 }
  0x8f   : > { %v190_v22 = vadd.f32 %v189_v20, %v166_v19  ;;  %v210_v23 = vadd.f32 %v209_v21, %v166_v19 }
  0x91   : > { %v492_v24 = vmax.f32 %v190_v22, 0.0  ;;  %v493_v25 = vmax.f32 %v210_v23, 0.0 }
  0x93   : > { %v508_v26 = vadd.f32 %v493_v25, %v492_v24 }
  0x95   : > { %v229_v27 = vpop.f32.mrf.mxu2  ;;  %v249_v28 = vpop.f32.mrf.mxu3  ;;  %509 = vadd.xlane.f32.xlu0 %v508_v26 }
  0x96   : > { %v230_v29 = vadd.f32 %v229_v27, %v166_v19  ;;  %v250_v30 = vadd.f32 %v249_v28, %v166_v19  ;;  %v269_v31 = vpop.f32.mrf.mxu0  ;;  %v289_v32 = vpop.f32.mrf.mxu1 }
  0x97   : > { %v270_v35 = vadd.f32 %v269_v31, %v166_v19  ;;  %v290_v36 = vadd.f32 %v289_v32, %v166_v19  ;;  %v755_v31 = vmov 2  }
  0x98   : > { %v494_v33 = vmax.f32 %v230_v29, 0.0  ;;  %v495_v34 = vmax.f32 %v250_v30, 0.0  ;;  %v143_v30 = vld [vmem:[%s853_s1 + $0x8] sm:$0xff]  ;;  %738 = vset.pattern.permute.xlu1 %v755_v31 }
  0x99   : > { %v496_v40 = vmax.f32 %v270_v35, 0.0  ;;  %v497_v41 = vmax.f32 %v290_v36, 0.0  ;;  %v144_v36 = vld [vmem:[%s853_s1 + $0x10] sm:$0xff] }
  0x9a   : > { %v511_v37 = vadd.f32 %v495_v34, %v494_v33 }
  0x9b   : > { %v514_v51 = vadd.f32 %v497_v41, %v496_v40 }
  0x9c   : > { %512 = vadd.xlane.f32.xlu1 %v511_v37  ;;  %v756_v37 = vmov 3  }
  0x9d   : > { %v309_v38 = vpop.f32.mrf.mxu2  ;;  %v329_v39 = vpop.f32.mrf.mxu3  ;;  %740 = vset.pattern.permute.xlu0 %v756_v37 }
  0x9e   : > { %v310_v42 = vadd.f32 %v309_v38, %v166_v19  ;;  %v330_v43 = vadd.f32 %v329_v39, %v166_v19  ;;  %v349_v44 = vpop.f32.mrf.mxu0  ;;  %v369_v45 = vpop.f32.mrf.mxu1 }
  0x9f   : > { %v350_v48 = vadd.f32 %v349_v44, %v166_v19  ;;  %v370_v49 = vadd.f32 %v369_v45, %v166_v19 }
  0xa0   : > { %v498_v46 = vmax.f32 %v310_v42, 0.0  ;;  %v499_v47 = vmax.f32 %v330_v43, 0.0  ;;  %v145_v42 = vld [vmem:[%s853_s1 + $0x18] sm:$0xff] }
  0xa1   : > { %v500_v54 = vmax.f32 %v350_v48, 0.0  ;;  %v501_v55 = vmax.f32 %v370_v49, 0.0 }
  0xa2   : > { %v517_v50 = vadd.f32 %v499_v47, %v498_v46 }
  0xa3   : > { %v520_v1 = vadd.f32 %v501_v55, %v500_v54 }
  0xa4   : > { %518 = vadd.xlane.f32.xlu2 %v517_v50  ;;  %515 = vadd.xlane.f32.xlu1 %v514_v51 }
  0xa5   : > { %v389_v52 = vpop.f32.mrf.mxu2  ;;  %v409_v53 = vpop.f32.mrf.mxu3 }
  0xa6   : > { %v390_v56 = vadd.f32 %v389_v52, %v166_v19  ;;  %v410_v57 = vadd.f32 %v409_v53, %v166_v19  ;;  %v429_v58 = vpop.f32.mrf.mxu0  ;;  %v449_v59 = vpop.f32.mrf.mxu1 }
  0xa7   : > { %v430_v62 = vadd.f32 %v429_v58, %v166_v19  ;;  %v450_v63 = vadd.f32 %v449_v59, %v166_v19 }
  0xa8   : > { %v502_v60 = vmax.f32 %v390_v56, 0.0  ;;  %v503_v61 = vmax.f32 %v410_v57, 0.0 }
  0xa9   : > { %v504_v5 = vmax.f32 %v430_v62, 0.0  ;;  %v505_v6 = vmax.f32 %v450_v63, 0.0 }
  0xaa   : > { %v523_v2 = vadd.f32 %v503_v61, %v502_v60 }
  0xab   : > { %v526_v11 = vadd.f32 %v505_v6, %v504_v5 }
  0xac   : > { %521 = vadd.xlane.f32.xlu2 %v520_v1  ;;  %524 = vadd.xlane.f32.xlu1 %v523_v2 }
  0xad   : > { %v469_v3 = vpop.f32.mrf.mxu2  ;;  %v489_v4 = vpop.f32.mrf.mxu3 }
  0xae   : > { %v470_v7 = vadd.f32 %v469_v3, %v166_v19  ;;  %v490_v8 = vadd.f32 %v489_v4, %v166_v19 }
  0xb0   : > { %v506_v9 = vmax.f32 %v470_v7, 0.0  ;;  %v507_v10 = vmax.f32 %v490_v8, 0.0 }
  0xb2   : > { %v529_v12 = vadd.f32 %v507_v10, %v506_v9 }
  0xb4   : > { %527 = vadd.xlane.f32.xlu2 %v526_v11  ;;  %530 = vadd.xlane.f32.xlu1 %v529_v12 }
  0xcc   : > { %548 = vperm.xlu2 %737, %v783_v0  }
  0xcd   : > { %576 = vperm.xlu1 %738, %v783_v0  }
  0xd4   : > { %739 = vset.pattern.permute.xlu2 %v756_v37 }
  0xd5   : > { %604 = vperm.xlu2 %739, %v783_v0  }
 0x108   : > { %v510_v17 = vpop.xlane.xlu0 %509 }
 0x10f   : > { %v513_v14 = vpop.xlane.xlu1 %512 }
 0x110   : > { %v533_v18 = vsel %vm532_vm1, %v510_v17, %v513_v14 }
 0x117   : > { %v519_v15 = vpop.xlane.xlu2 %518  ;;  %v516_v16 = vpop.xlane.xlu1 %515 }
 0x118   : > { %v535_v19 = vsel %vm534_vm2, %v533_v18, %v516_v16 }
 0x119   : > { %v537_v22 = vsel %vm536_vm3, %v535_v19, %v519_v15 }
 0x11f   : > { %v522_v20 = vpop.xlane.xlu2 %521  ;;  %v525_v21 = vpop.xlane.xlu1 %524 }
 0x120   : > { %v539_v23 = vsel %vm538_vm4, %v537_v22, %v522_v20 }
 0x121   : > { %v541_v24 = vsel %vm540_vm5, %v539_v23, %v525_v21 }
 0x127   : > { %v528_v25 = vpop.xlane.xlu2 %527  ;;  %v531_v26 = vpop.xlane.xlu1 %530 }
 0x128   : > { %v543_v27 = vsel %vm542_vm6, %v541_v24, %v528_v25 }
 0x129   : > { %v545_v28 = vsel %vm544_vm7, %v543_v27, %v531_v26 }
 0x12a   : > { %v546_v29 = vmul.f32 0.00390625, %v545_v28 }
 0x12c   : > { %569 = vmatpush.msra.mxu0 %v546_v29 }
 0x12d   : > { %718 = vmatmul.msk.f32.vlgmr.msra.gmra.mxu0 %vm168_vm0, %v143_v30 }
 0x12f   : > { %v549_v32 = vpop.permute.xlu2 %548 }
 0x137   : > { %v605_v43 = vpop.permute.xlu2 %604 }
 0x13f   : > { %v577_v38 = vpop.permute.xlu1 %576 }
 0x1aa   : > { %v571_v33 = vpop.f32.mrf.mxu0 }
 0x1ab   : > { %v572_v34 = vadd.f32 %v571_v33, %v549_v32 }
 0x1ad   : > { %v574_v35 = vmax.f32 %v572_v34, 0.0 }
 0x1af   : > { %597 = vmatpush.msra.mxu1 %v574_v35 }
 0x1b0   : > { %719 = vmatmul.msk.f32.vlgmr.msra.gmra.mxu1 %vm168_vm0, %v144_v36 }
 0x22d   : > { %v599_v39 = vpop.f32.mrf.mxu1 }
 0x22e   : > { %v600_v40 = vadd.f32 %v599_v39, %v577_v38 }
 0x230   : > { %v602_v41 = vmax.f32 %v600_v40, 0.0 }
 0x232   : > { %625 = vmatpush.msra.mxu2 %v602_v41 }
 0x233   : > { %720 = vmatmul.msk.f32.vlgmr.msra.gmra.mxu2 %vm168_vm0, %v145_v42 }
 0x2b6   : > { %v627_v44 = vpop.f32.mrf.mxu2 }
 0x2b7   : > { %v628_v45 = vadd.f32 %v627_v44, %v605_v43 }
 0x2b9   : > { %v631_v46 = vand.u32 2147483647, %v628_v45  ;;  %v630_v51 = vmax.f32 %v628_v45, 0.0 }
 0x2bb   : > { %v632_v47 = vsub.f32 0.0, %v631_v46 }
 0x2bd   : > { %v633_v48 = vmul.f32 1.442695, %v632_v47 }
 0x2bf   : > { %741 = vpow2.f32 %v633_v48 }
 0x2c5   : > { %v742_v0 = vpop.eup %741 }
 0x2c6   : > { %v635_v49 = vadd.f32 1.0, %v742_v0 }
 0x2c8   : > { %743 = vlog2.f32 %v635_v49 }
 0x2ce   : > { %v744_v50 = vpop.eup %743 }
 0x2cf   : > { %v637_v52 = vmul.f32 0.6931472, %v744_v50 }
 0x2d1   : > { %v638_v53 = vadd.f32 %v637_v52, %v630_v51 }
 0x2d3   : > { %v639_v54 = vadd.f32 1e-06, %v638_v53 }
 0x2d5   : > { %640 = vst.msk [vmem:[%s141_s28] sm:$0xff] %vm168_vm0, %v639_v54 }
 0x2d6 PF: > { %s12_s9 = sadd.s32 1, %s751_s9  }
 0x2d7   : > { %p9_p4 = scmp.ge.s32.totalorder %s12_s9, 4  }
 0x2d9   :  { %11 = sbr.rel (!%p9_p4) target bundleno = 1 (0x1), region = 58 }

</bundles_post_ra>
